<compile_context>
chip_gen: v7x
topology: tpu7x:2x2x1
jax: 0.10.0
libtpu: 0.0.40
codegen_flags: <defaults>
</compile_context>

<pallas_src>
import functools

import jax
import jax.numpy as jnp
from jax.experimental import pallas as pl
from jax.experimental.pallas import tpu as pltpu

B, S = 2, 8        # batch, sequence (attack_mask shape)
DIM = 128          # hidden size — multiple of 128 so the kernel is lane-dense
EPS = 1.0          # adversary L2 budget (epsilon)
LANE = 128


def gd_adversary_kernel(x_ref, atk_ref, mask_ref, o_ref, *, eps):
    """Fused clip_attack + masked residual add.

    x_ref    : (R, Dp)  activations, R = B*S, Dp = dim padded to a multiple of 128
    atk_ref  : (R, Dp)  raw attack parameter (zero-padded -> norm unchanged)
    mask_ref : (R, 1)   attack_mask as {0.0, 1.0}
    o_ref    : (R, Dp)  output
    """
    x = x_ref[...]
    a = atk_ref[...].astype(jnp.float32)

    # clip_attack: scale = 1 / max(1, ||a|| / eps) == min(1, eps * rsqrt(||a||^2))
    sq = jnp.sum(a * a, axis=-1, keepdims=True)              # (R, 1) XLU reduction
    inv_norm = jax.lax.rsqrt(sq + 1e-12)                      # EUP, own VLIW slot
    scale = jnp.minimum(jnp.float32(1.0), jnp.float32(eps) * inv_norm)

    # forward: add the (clipped) attack only where attack_mask is set.
    m = mask_ref[...]                                         # (R, 1)
    o_ref[...] = (x + (m * scale) * a).astype(o_ref.dtype)


def gd_adversary(x, attack, attack_mask, *, epsilon=EPS):
    """x: (B, S_x, D), attack: (B, S_a, D), attack_mask: (B, S_a) bool, S_a >= S_x."""
    Bx, Sx, D = x.shape
    Ba, Sa, Da = attack.shape
    assert (Bx, D) == (Ba, Da)
    if Sa < Sx:
        raise ValueError(f"Attack shape {attack.shape} is shorter than input shape {x.shape}")
    # Decode-step early exit from the PyTorch module (static-shape Python branch).
    if Sx == 1 and Sa != 1:
        return x

    atk = attack[:, :Sx, :]
    mask = attack_mask[:, :Sx].astype(jnp.float32)

    # Flatten (B, S) -> rows; pad feature dim to a lane-dense multiple of 128.
    rows = Bx * Sx
    d_pad = ((D + LANE - 1) // LANE) * LANE
    x2 = x.reshape(rows, D)
    a2 = atk.reshape(rows, D)
    if d_pad != D:
        pad = ((0, 0), (0, d_pad - D))
        x2 = jnp.pad(x2, pad)
        a2 = jnp.pad(a2, pad)          # zero pad => L2 norm of each row unchanged
    m2 = mask.reshape(rows, 1)

    out2 = pl.pallas_call(
        functools.partial(gd_adversary_kernel, eps=float(epsilon)),
        out_shape=jax.ShapeDtypeStruct((rows, d_pad), x.dtype),
        in_specs=[
            pl.BlockSpec(memory_space=pltpu.MemorySpace.VMEM),   # x      (whole array)
            pl.BlockSpec(memory_space=pltpu.MemorySpace.VMEM),   # attack (whole array)
            pl.BlockSpec(memory_space=pltpu.MemorySpace.VMEM),   # mask   (whole array)
        ],
        out_specs=pl.BlockSpec(memory_space=pltpu.MemorySpace.VMEM),
    )(x2, a2, m2)

    return out2[:, :D].reshape(Bx, Sx, D)


def reference(x, attack, attack_mask, *, epsilon=EPS):
    # clip_attack()
    norms = jnp.sqrt(jnp.sum(attack * attack, axis=-1, keepdims=True))
    clipped = attack / jnp.maximum(norms / epsilon, 1.0)
    # forward(): masked residual add (functional form of x[mask] += attack[mask])
    return x + attack_mask[..., None].astype(x.dtype) * clipped


if __name__ == "__main__":
    key = jax.random.PRNGKey(0)
    kx, ka, km = jax.random.split(key, 3)
    x = jax.random.normal(kx, (B, S, DIM), dtype=jnp.float32)
    # kaiming-uniform-style init for the attack parameter (norm > eps, so the
    # clip path is actually exercised)
    attack = jax.random.uniform(ka, (B, S, DIM), dtype=jnp.float32, minval=-0.3, maxval=0.3)
    attack_mask = jax.random.bernoulli(km, 0.5, (B, S))

    out = gd_adversary(x, attack, attack_mask, epsilon=EPS)
    out = jax.block_until_ready(out)

    ref = reference(x, attack, attack_mask, epsilon=EPS)
    assert out.shape == (B, S, DIM)
    assert jnp.allclose(out, ref, atol=1e-3, rtol=1e-3), "mismatch vs reference"
    print("KERNEL_OK")
</pallas_src>

<mosaic_0001>
module attributes {stable_mosaic.version = 11 : i64} {
  func.func @gd_adversary_kernel(%arg0: memref<16x128xf32, #tpu.memory_space<vmem>>, %arg1: memref<16x128xf32, #tpu.memory_space<vmem>>, %arg2: memref<16x1xf32, #tpu.memory_space<vmem>>, %arg3: memref<16x128xf32, #tpu.memory_space<vmem>>) attributes {dimension_semantics = [], scalar_prefetch = 0 : i64, scratch_operands = 0 : i64, tpu.core_type = #tpu.core_type<tc>} {
    %c0 = arith.constant 0 : index
    %c0_0 = arith.constant 0 : index
    %0 = vector.load %arg0[%c0, %c0_0] : memref<16x128xf32, #tpu.memory_space<vmem>>, vector<16x128xf32>
    %c0_1 = arith.constant 0 : index
    %c0_2 = arith.constant 0 : index
    %1 = vector.load %arg1[%c0_1, %c0_2] : memref<16x128xf32, #tpu.memory_space<vmem>>, vector<16x128xf32>
    %2 = arith.mulf %1, %1 : vector<16x128xf32>
    %cst = arith.constant dense<0.000000e+00> : vector<16xf32>
    %3 = vector.multi_reduction <add>, %2, %cst [1] : vector<16x128xf32> to vector<16xf32>
    %4 = vector.shape_cast %3 : vector<16xf32> to vector<16x1xf32>
    %cst_3 = arith.constant 9.99999996E-13 : f32
    %5 = vector.broadcast %cst_3 : f32 to vector<16x1xf32>
    %6 = arith.addf %4, %5 : vector<16x1xf32>
    %7 = math.rsqrt %6 : vector<16x1xf32>
    %cst_4 = arith.constant 1.000000e+00 : f32
    %8 = vector.broadcast %cst_4 : f32 to vector<16x1xf32>
    %9 = arith.mulf %8, %7 : vector<16x1xf32>
    %cst_5 = arith.constant 1.000000e+00 : f32
    %10 = vector.broadcast %cst_5 : f32 to vector<16x1xf32>
    %11 = arith.minimumf %10, %9 : vector<16x1xf32>
    %c0_6 = arith.constant 0 : index
    %c0_7 = arith.constant 0 : index
    %12 = vector.load %arg2[%c0_6, %c0_7] : memref<16x1xf32, #tpu.memory_space<vmem>>, vector<16x1xf32>
    %13 = arith.mulf %12, %11 : vector<16x1xf32>
    %14 = vector.broadcast %13 : vector<16x1xf32> to vector<16x128xf32>
    %15 = arith.mulf %14, %1 : vector<16x128xf32>
    %16 = arith.addf %0, %15 : vector<16x128xf32>
    %c0_8 = arith.constant 0 : index
    %c0_9 = arith.constant 0 : index
    %17 = vector.load %arg3[%c0_8, %c0_9] : memref<16x128xf32, #tpu.memory_space<vmem>>, vector<16x128xf32>
    tpu.vector_store %arg3[%c0_8, %c0_9], %16 {strides = array<i32>} : memref<16x128xf32, #tpu.memory_space<vmem>>, vector<16x128xf32>,
    return
  }
}

</mosaic_0001>

<bundles_post_ra>
// kernel: tpu_custom_call.1
= control target key start
LH: loop header
LB: loop body
LE: loop exit
PB: predicated region body
PF: predicated region fallthrough
CT: control target
= control target key end

     0   :  { %8 = vsyncpa [#allocation3], 0  ;;  %s208_s0 = inlined_call_operand.vmem [shape: f32[16,128], index: 0, kind: input, shape index: {}]   ;;  %s209_s1 = inlined_call_operand.hbm [shape: f32[16,128], index: 1, kind: input, shape index: {}]   ;;  %s210_s2 = inlined_call_operand.vmem [shape: f32[16,1], index: 2, kind: input, shape index: {}]   ;;  %s211_s3 = inlined_call_operand.hbm [shape: f32[16,128], index: 3, kind: output, shape index: {}]  }
   0x1   :  { %9 = vsyncpa [#allocation4], 0  ;;  %s141_s12 = smov [#allocation2]   ;;  %s93_s16 = scalar_lea.hbm %s209_s1, 256 }
   0x2   :  { %s17_s13 = sshll.u32 %s141_s12, 4  ;;  %p94_p0 = scmp.ne.s32.totalorder %s209_s1, %s93_s16  ;;  %s18_s13 = int_to_ptr.vmem [resolvable:$true] %s17_s13 }
   0x3   :  { %p97_p1 = scmp.lt.u32.totalorder %s93_s16, %s209_s1 }
   0x5   :  { %p99_p2 = pnand %p97_p1, %p94_p0 }
   0x7   :  { %102 = shalt.err (!%p99_p2)
}
   0x8   :  { %s103_s21 = scalar_lea.vmem %s18_s13, 256  ;;  %p108_p4 = scmp.lt.s32.totalorder %s18_s13, %s18_s13 }
   0x9   :  { %p104_p3 = scmp.ne.s32.totalorder %s18_s13, %s103_s21  ;;  %p109_p5 = scmp.lt.s32.totalorder %s103_s21, %s103_s21 }
   0xb   :  { %p110_p6 = por %p109_p5, %p108_p4 }
   0xd   :  { %p111_p7 = pnand %p110_p6, %p104_p3 }
   0xf   :  { %114 = shalt.err (!%p111_p7)
}
  0x10   :  { %s142_s22 = smov 128   ;;  %s143_s23 = smov 8  }
  0x11   :  { %23 = dma.hbm_to_vmem [thread:$0]  %s209_s1, 256, %s18_s13, [#allocation3], %s142_s22, %s142_s22, %s143_s23  }
  0x12   :  { %137 = dma.done.wait [#allocation3], 256  }
  0x13   :  { %138 = vsyncadd [#allocation3], 4294967040  ;;  %v31_v0 = vld [vmem:[#allocation2] sm:$0xff]  ;;  %v32_v1 = vld [vmem:[#allocation2 + $0x8] sm:$0xff]  ;;  %v144_v4 = vmov 0   ;;  %s145_s6 = smov [#allocation5]  }
  0x14   :  { %v33_v2 = vmul.f32 %v31_v0, %v31_v0  ;;  %v34_v3 = vmul.f32 %v32_v1, %v32_v1  ;;  %87 = vset.pattern.permute.xlu1 %v144_v4  ;;  %88 = vset.pattern.permute.xlu0 %v144_v4  ;;  %v45_v10 = vld [vmem:[%s210_s2] sm:$0xff]  ;;  %v46_v14 = vld [vmem:[%s210_s2 + $0x8] sm:$0xff]  ;;  %s70_s7 = sshll.u32 %s145_s6, 4  ;;  %s71_s7 = int_to_ptr.vmem [resolvable:$true] %s70_s7 }
  0x15   :  { %v29_v18 = vld [vmem:[%s208_s0] sm:$0xff]  ;;  %v30_v22 = vld [vmem:[%s208_s0 + $0x8] sm:$0xff]  ;;  %s115_s2 = scalar_lea.vmem %s71_s7, 256  ;;  %p120_p9 = scmp.lt.s32.totalorder %s71_s7, %s71_s7 }
  0x16   :  { %35 = vadd.xlane.f32.xlu0 %v33_v2  ;;  %p116_p8 = scmp.ne.s32.totalorder %s71_s7, %s115_s2  ;;  %p121_p10 = scmp.lt.s32.totalorder %s115_s2, %s115_s2 }
  0x18   :  { %p122_p11 = por %p121_p10, %p120_p9 }
  0x1a   :  { %37 = vadd.xlane.f32.xlu0 %v34_v3  ;;  %p123_p12 = pnand %p122_p11, %p116_p8 }
  0xa3   :  { %v36_v5 = vpop.xlane.xlu0 %35 }
  0xa4   :  { %v39_v6 = vadd.f32 1e-12, %v36_v5 }
  0xa6   :  { %89 = vrsqrt.f32 %v39_v6 }
  0xa7   :  { %v38_v7 = vpop.xlane.xlu0 %37 }
  0xa8   :  { %v40_v8 = vadd.f32 1e-12, %v38_v7 }
  0xaa   :  { %91 = vrsqrt.f32 %v40_v8 }
  0xb0   :  { %v90_v9 = vpop.eup %89 }
  0xb1   :  { %v43_v11 = vmin.f32 %v90_v9, 1.0 }
  0xb3   :  { %v47_v12 = vmul.f32 %v45_v10, %v43_v11 }
  0xb4   :  { %v92_v13 = vpop.eup %91 }
  0xb5   :  { %v44_v15 = vmin.f32 %v92_v13, 1.0  ;;  %51 = vperm.xlu1 %87, %v47_v12  }
  0xb7   :  { %v48_v16 = vmul.f32 %v46_v14, %v44_v15 }
  0xb9   :  { %56 = vperm.xlu1 %87, %v48_v16  }
 0x134   :  { %v52_v17 = vpop.permute.xlu1 %51 }
 0x135   :  { %v59_v19 = vmul.f32 %v52_v17, %v31_v0 }
 0x137   :  { %v61_v20 = vadd.f32 %v59_v19, %v29_v18 }
 0x138   :  { %v57_v21 = vpop.permute.xlu1 %56 }
 0x139   :  { %63 = vst [vmem:[#allocation5] sm:$0xff] %v61_v20  ;;  %v60_v23 = vmul.f32 %v57_v21, %v32_v1 }
 0x13b   :  { %v62_v24 = vadd.f32 %v60_v23, %v30_v22 }
 0x13d   :  { %64 = vst [vmem:[#allocation5 + $0x8] sm:$0xff] %v62_v24 }
 0x13e   :  { %126 = shalt.err (!%p123_p12)
}
 0x13f   :  { %s127_s10 = scalar_lea.hbm %s211_s3, 256 }
 0x140   :  { %p128_p13 = scmp.ne.s32.totalorder %s211_s3, %s127_s10  ;;  %p131_p0 = scmp.lt.u32.totalorder %s127_s10, %s211_s3 }
 0x142   :  { %p133_p1 = pnand %p131_p0, %p128_p13 }
 0x144   :  { %136 = shalt.err (!%p133_p1)
}
 0x145   :  { %76 = dma.vmem_to_hbm [thread:$0]  %s71_s7, 256, %s211_s3, [#allocation4], %s142_s22, %s142_s22, %s143_s23  }
 0x146   :  { %139 = dma.done.wait [#allocation4], 256  }
 0x147   :  { %140 = vsyncadd [#allocation4], 4294967040 }
 0x148   :  { %80 = vsyncpa [#allocation3], 1 }
 0x149   :  { %81 = vsyncpa [#allocation4], 1 }

</bundles_post_ra>
